<compile_context>
chip_gen: v6e
topology: v6e:2x2x1
jax: 0.10.0
libtpu: 0.0.40
codegen_flags: <defaults>
</compile_context>

<pallas_src>
import functools
import math

import jax
import jax.numpy as jnp
from jax import lax
from jax.experimental import pallas as pl
from jax.experimental.pallas import tpu as pltpu

_VMEM_LIMIT = 48 * 1024 * 1024   # <= 48 MiB: safe on v7x (64 MiB/TC), fine on v5e/v6e.


def _round_up(v, m):
    return ((v + m - 1) // m) * m


def _proj_kernel(x_ref, w_ref, ab_ref, h_ref, f_ref):
    """h = X @ W (bf16 MXU operands, f32 acc) and fused attention matvec
    f = h @ [a1 | a2 | 0...] as a lane-dense (TQ, 128) block.  A column of
    ones is written into h's padding so kernel 2 can read the softmax row-sum
    from the MXU output (p @ ones-column) instead of doing an XLU reduce."""
    h = jnp.dot(x_ref[...], w_ref[...], preferred_element_type=jnp.float32)   # (TQ, Dp) f32
    f_ref[...] = jnp.dot(h, ab_ref[...], preferred_element_type=jnp.float32)  # (TQ, 128) f32
    col = lax.broadcasted_iota(jnp.int32, h.shape, 1)
    ones_col = h.shape[1] - 1            # d_pad-1 >= d_out, i.e. always a padding lane
    h_ref[...] = jnp.where(col == ones_col, 1.0, h).astype(h_ref.dtype)


def _attn_kernel(f1_ref, f2t_ref, adj_ref, h_ref, out_ref, m_sc, *,
                 neg_slope, apply_elu, exp_dtype):
    """Flash-style masked-softmax GAT attention.
    grid = (query tiles ["parallel"], key tiles ["arbitrary", innermost]).
    Running row-max in m_sc (VMEM scratch); the un-normalized accumulator and
    its row-sum (in the ones column) live in the resident f32 output block."""
    kt = pl.program_id(1)

    @pl.when(kt == 0)
    def _():
        m_sc[...] = jnp.full_like(m_sc, -jnp.inf)
        out_ref[...] = jnp.zeros_like(out_ref)

    # e[i, j] = leaky_relu(f1[i] + f2[j])  — broadcast add + 2-op leaky relu.
    e = f1_ref[...] + f2t_ref[...]                          # (TQ, TK) f32
    e = jnp.maximum(e, neg_slope * e)
    # Mask non-edges with the same -9e15 constant as the PyTorch module.
    # (Rows with zero edges — incl. padded query rows — get a uniform softmax
    # over n_pad keys; padded query rows are sliced away by the wrapper.)
    masked = jnp.where(adj_ref[...] > 0, e, -9.0e15)

    # Online softmax update.
    m_prev = m_sc[...]
    m_new = jnp.maximum(m_prev, jnp.max(masked, axis=1, keepdims=True))
    alpha = jnp.exp(m_prev - m_new)                         # (TQ, 1) f32
    # bf16 exp on the EUP (v6e/v7x); p is the bf16 MXU operand of p @ h.
    p = jnp.exp((masked - m_new).astype(exp_dtype)).astype(jnp.bfloat16)

    out_ref[...] = alpha * out_ref[...] + jnp.dot(
        p, h_ref[...], preferred_element_type=jnp.float32)  # (TQ, Dp) f32
    m_sc[...] = m_new

    @pl.when(kt == pl.num_programs(1) - 1)
    def _():
        d_pad = out_ref.shape[1]
        s = out_ref[:, d_pad - 1:d_pad]                     # row-sum via ones column (MXU)
        # NOTE: approx reciprocal is fine for inference tolerance; switch to an
        # exact divide if this kernel is reused for training parity.
        res = out_ref[...] * pl.reciprocal(s, approx=True)
        if apply_elu:                                       # concat=True path
            res = jnp.where(res > 0, res, jnp.expm1(res))   # ELU
        out_ref[...] = res


def dgat_head(x_batched, adj, w, a, *, neg_slope=0.2, concat=True,
              block_q=128, block_k=512, exp_dtype=jnp.bfloat16):
    """x_batched: (B, N, D_in) — only x_batched[0] is used (matches `input[0]`).
    adj: (N, N); w: (D_in, D_out); a: (2*D_out, 1). Returns (N, D_out) f32.
    exp_dtype: use jnp.float32 on v5e (no bf16 EUP)."""
    x = x_batched[0]
    N, d_in = x.shape
    d_out = w.shape[1]

    # --- tile / padding choices -------------------------------------------
    d_pad = _round_up(d_out + 1, 128)                 # >=1 spare lane for the ones column
    n_min = _round_up(N, 128)                         # lane-dense adj / f2t last dims
    tq = min(_round_up(max(int(block_q), 128), 128), n_min)
    tk = min(_round_up(max(int(block_k), 128), 128), n_min)
    n_pad = _round_up(N, math.lcm(tq, tk))

    # Cast/pad once in the wrapper (bf16 halves x/W HBM + VMEM traffic).
    x_p = jnp.pad(x, ((0, n_pad - N), (0, 0))).astype(jnp.bfloat16)
    w_p = jnp.pad(w, ((0, 0), (0, d_pad - d_out))).astype(jnp.bfloat16)
    # adj streamed as int8 (TODO(synk): bit-pack + cache across calls/heads).
    adj_i8 = jnp.pad((adj > 0).astype(jnp.int8), ((0, n_pad - N), (0, n_pad - N)))
    # Fused attention matvec weights as a lane-dense (Dp, 128) block:
    # column 0 = a1, column 1 = a2, everything else zero.
    ab_p = jnp.zeros((d_pad, 128), jnp.float32)
    ab_p = ab_p.at[:d_out, 0].set(a[:d_out, 0].astype(jnp.float32))
    ab_p = ab_p.at[:d_out, 1].set(a[d_out:, 0].astype(jnp.float32))

    # --- kernel 1: projection + fused attention matvec ---------------------
    h_bf, f = pl.pallas_call(
        _proj_kernel,
        out_shape=(jax.ShapeDtypeStruct((n_pad, d_pad), jnp.bfloat16),
                   jax.ShapeDtypeStruct((n_pad, 128), jnp.float32)),
        grid=(n_pad // tq,),
        in_specs=[pl.BlockSpec((tq, d_in), lambda i: (i, 0)),
                  pl.BlockSpec((d_in, d_pad), lambda i: (0, 0)),
                  pl.BlockSpec((d_pad, 128), lambda i: (0, 0))],
        out_specs=(pl.BlockSpec((tq, d_pad), lambda i: (i, 0)),
                   pl.BlockSpec((tq, 128), lambda i: (i, 0))),
        compiler_params=pltpu.CompilerParams(
            dimension_semantics=("parallel",),
            vmem_limit_bytes=_VMEM_LIMIT),
    )(x_p, w_p, ab_p)

    # Tiny layout glue: f1 as a per-row-tile column, f2 as a key-tiled row.
    f1 = f[:, 0:1]                     # (Np, 1)
    f2t = jnp.transpose(f[:, 1:2])     # (1, Np)

    # --- kernel 2: flash-style masked softmax attention + aggregation ------
    attn_kernel = functools.partial(_attn_kernel,
                                    neg_slope=float(neg_slope),
                                    apply_elu=bool(concat),
                                    exp_dtype=exp_dtype)
    out_p = pl.pallas_call(
        attn_kernel,
        out_shape=jax.ShapeDtypeStruct((n_pad, d_pad), jnp.float32),
        grid=(n_pad // tq, n_pad // tk),
        in_specs=[pl.BlockSpec((tq, 1), lambda i, k: (i, 0)),
                  pl.BlockSpec((1, tk), lambda i, k: (0, k)),
                  pl.BlockSpec((tq, tk), lambda i, k: (i, k)),
                  pl.BlockSpec((tk, d_pad), lambda i, k: (k, 0))],
        out_specs=pl.BlockSpec((tq, d_pad), lambda i, k: (i, 0)),
        scratch_shapes=[pltpu.VMEM((tq, 1), jnp.float32)],
        compiler_params=pltpu.CompilerParams(
            dimension_semantics=("parallel", "arbitrary"),
            vmem_limit_bytes=_VMEM_LIMIT),
    )(f1, f2t, adj_i8, h_bf)

    return out_p[:N, :d_out]


if __name__ == "__main__":
    key = jax.random.PRNGKey(0)
    # Small shapes, but sized so the flash grid has multiple query AND key
    # tiles (N=192, tq=tk=128 -> n_pad=256, grid=(2,2)): exercises the online
    # softmax across key tiles and the padded-row/column masking.
    B, N, d_in, d_out = 2, 192, 16, 32
    k1, k2, k3, k4 = jax.random.split(key, 4)

    def xavier_uniform(k, shape, gain=1.414):
        bound = gain * math.sqrt(6.0 / (shape[0] + shape[1]))
        return jax.random.uniform(k, shape, jnp.float32, -bound, bound)

    w = xavier_uniform(k1, (d_in, d_out))
    a = xavier_uniform(k2, (2 * d_out, 1))
    x = jax.random.normal(k3, (B, N, d_in), jnp.float32)
    adj = (jax.random.uniform(k4, (N, N)) > 0.5).astype(jnp.float32)
    adj = jnp.minimum(adj + jnp.eye(N, dtype=jnp.float32), 1.0)  # self-loops

    out = dgat_head(x, adj, w, a, neg_slope=0.2, concat=True,
                    block_q=128, block_k=128)
    out = jax.block_until_ready(out)

    # pure-JAX f32 reference (same math as the PyTorch forward)
    h = x[0] @ w
    e = jax.nn.leaky_relu(h @ a[:d_out] + (h @ a[d_out:]).T, 0.2)
    masked = jnp.where(adj > 0, e, -9.0e15)
    attn = jax.nn.softmax(masked, axis=1)
    ref = jax.nn.elu(attn @ h)

    assert out.shape == (N, d_out)
    # tolerance reflects bf16 MXU operands, bf16 exp and approx reciprocal
    assert jnp.allclose(out, ref, atol=5e-2, rtol=5e-2), \
        float(jnp.max(jnp.abs(out - ref)))
    print("KERNEL_OK")
</pallas_src>

<mosaic_0001>
module attributes {stable_mosaic.version = 11 : i64} {
  func.func @_proj_kernel(%arg0: i32, %arg1: memref<128x16xbf16, #tpu.memory_space<vmem>>, %arg2: memref<16x128xbf16, #tpu.memory_space<vmem>>, %arg3: memref<128x128xf32, #tpu.memory_space<vmem>>, %arg4: memref<128x128xbf16, #tpu.memory_space<vmem>>, %arg5: memref<128x128xf32, #tpu.memory_space<vmem>>) attributes {dimension_semantics = [#tpu.dimension_semantics<parallel>], iteration_bounds = array<i64: 2>, scalar_prefetch = 0 : i64, scratch_operands = 0 : i64, tpu.core_type = #tpu.core_type<tc>, window_params = [{transform_indices = @transform_0, window_bounds = array<i64: 128, 16>}, {pipeline_mode = #tpu.pipeline_mode<synchronous>, transform_indices = @transform_1, window_bounds = array<i64: 16, 128>}, {pipeline_mode = #tpu.pipeline_mode<synchronous>, transform_indices = @transform_2, window_bounds = array<i64: 128, 128>}, {transform_indices = @transform_3, window_bounds = array<i64: 128, 128>}, {transform_indices = @transform_4, window_bounds = array<i64: 128, 128>}]} {
    %c0 = arith.constant 0 : index
    %c0_0 = arith.constant 0 : index
    %0 = vector.load %arg1[%c0, %c0_0] : memref<128x16xbf16, #tpu.memory_space<vmem>>, vector<128x16xbf16>
    %c0_1 = arith.constant 0 : index
    %c0_2 = arith.constant 0 : index
    %1 = vector.load %arg2[%c0_1, %c0_2] : memref<16x128xbf16, #tpu.memory_space<vmem>>, vector<16x128xbf16>
    %cst = arith.constant dense<0.000000e+00> : vector<128x128xf32>
    %2 = tpu.matmul %0, %1, %cst {dimension_numbers = #tpu.dot_dimension_numbers<[1], [0], [0], [1], [0, 0, 1, 1], [], []>} : vector<128x16xbf16>, vector<16x128xbf16>, vector<128x128xf32> -> vector<128x128xf32>
    %c0_3 = arith.constant 0 : index
    %c0_4 = arith.constant 0 : index
    %3 = vector.load %arg3[%c0_3, %c0_4] : memref<128x128xf32, #tpu.memory_space<vmem>>, vector<128x128xf32>
    %cst_5 = arith.constant dense<0.000000e+00> : vector<128x128xf32>
    %4 = tpu.matmul %2, %3, %cst_5 {dimension_numbers = #tpu.dot_dimension_numbers<[1], [0], [0], [1], [0, 0, 1, 1], [], []>} : vector<128x128xf32>, vector<128x128xf32>, vector<128x128xf32> -> vector<128x128xf32>
    %c0_6 = arith.constant 0 : index
    %c0_7 = arith.constant 0 : index
    %5 = vector.load %arg5[%c0_6, %c0_7] : memref<128x128xf32, #tpu.memory_space<vmem>>, vector<128x128xf32>
    tpu.vector_store %arg5[%c0_6, %c0_7], %4 {strides = array<i32>} : memref<128x128xf32, #tpu.memory_space<vmem>>, vector<128x128xf32>,
    %6 = tpu.iota {dimensions = array<i32: 1>} : vector<128x128xi32>
    %c127_i32 = arith.constant 127 : i32
    %7 = vector.broadcast %c127_i32 : i32 to vector<128x128xi32>
    %8 = arith.cmpi eq, %6, %7 : vector<128x128xi32>
    %cst_8 = arith.constant 1.000000e+00 : f32
    %9 = vector.broadcast %cst_8 : f32 to vector<128x128xf32>
    %10 = arith.select %8, %9, %2 : vector<128x128xi1>, vector<128x128xf32>
    %11 = arith.truncf %10 : vector<128x128xf32> to vector<128x128xbf16>
    %c0_9 = arith.constant 0 : index
    %c0_10 = arith.constant 0 : index
    %12 = vector.load %arg4[%c0_9, %c0_10] : memref<128x128xbf16, #tpu.memory_space<vmem>>, vector<128x128xbf16>
    tpu.vector_store %arg4[%c0_9, %c0_10], %11 {strides = array<i32>} : memref<128x128xbf16, #tpu.memory_space<vmem>>, vector<128x128xbf16>,
    return
  }
  func.func @transform_0(%arg0: i32) -> (i32, i32) {
    %c0_i32 = arith.constant 0 : i32
    %c0_i32_0 = arith.constant 0 : i32
    return %arg0, %c0_i32 : i32, i32
  }
  func.func @transform_1(%arg0: i32) -> (i32, i32) {
    %c0_i32 = arith.constant 0 : i32
    %c0_i32_0 = arith.constant 0 : i32
    %c0_i32_1 = arith.constant 0 : i32
    return %c0_i32, %c0_i32_0 : i32, i32
  }
  func.func @transform_2(%arg0: i32) -> (i32, i32) {
    %c0_i32 = arith.constant 0 : i32
    %c0_i32_0 = arith.constant 0 : i32
    %c0_i32_1 = arith.constant 0 : i32
    return %c0_i32, %c0_i32_0 : i32, i32
  }
  func.func @transform_3(%arg0: i32) -> (i32, i32) {
    %c0_i32 = arith.constant 0 : i32
    %c0_i32_0 = arith.constant 0 : i32
    return %arg0, %c0_i32 : i32, i32
  }
  func.func @transform_4(%arg0: i32) -> (i32, i32) {
    %c0_i32 = arith.constant 0 : i32
    %c0_i32_0 = arith.constant 0 : i32
    return %arg0, %c0_i32 : i32, i32
  }
}

</mosaic_0001>

<bundles_post_ra>
// kernel: tpu_custom_call.1
= control target key start
LH: loop header
LB: loop body
LE: loop exit
PB: predicated region body
PF: predicated region fallthrough
CT: control target
= control target key end

     0   :  { %10 = vsyncpa [#allocation3], 0  ;;  %s1514_s0 = inlined_call_operand.vmem [shape: bf16[256,16], index: 0, kind: input, shape index: {}]   ;;  %s1515_s1 = inlined_call_operand.vmem [shape: bf16[16,128], index: 1, kind: input, shape index: {}]   ;;  %s1516_s2 = inlined_call_operand.vmem [shape: f32[128,128], index: 2, kind: input, shape index: {}]   ;;  %s1517_s3 = inlined_call_operand.hbm [shape: bf16[256,128], index: 3, kind: output, shape index: {0}]   ;;  %s1518_s4 = inlined_call_operand.hbm [shape: f32[256,128], index: 4, kind: output, shape index: {1}]  }
   0x1   :  { %12 = vsyncpa [#allocation3 + $0x1], 0 }
   0x2   :  { %13 = vsyncpa [#allocation5], 0 }
   0x3   :  { %15 = vsyncpa [#allocation5 + $0x1], 0  ;;  %s1244_s15 = smov 0   ;;  %s1246_s16 = smov 0  }
   0x4   :  { %s1248_s17 = smov 0   ;;  %s1250_s18 = smov 0  }
   0x5 LB: > { %s1265_s19 = sadd.s32 4294967295, %s1211_s18   ;;  %s803_s20 = sadd.s32 4294967294, %s1211_s18   ;;  %s1211_s18 = sphi %s1250_s18, %s1524_s18   ;;  %s1207_s17 = sphi %s1248_s17, %s1523_s17   ;;  %s1203_s16 = sphi %s1246_s16, %s1522_s16   ;;  %s1199_s15 = sphi %s1244_s15, %s1521_s15  }
   0x6   : > { %s1269_s21 = sadd.s32 1, %s1211_s18   ;;  %s96_s22 = sadd.s32 1, %s1207_s17 }
   0x7   : > { %s93_s23 = ssub.s32 %s1211_s18, %s1269_s21  ;;  %p106_p0 = scmp.ne.s32.totalorder %s1207_s17, %s1203_s16 }
   0x8   : > { %p94_p1 = scmp.eq.s32.totalorder %s93_s23, 0  ;;  %p107_p2 = scmp.eq.s32.totalorder %s1265_s19, 1 }
   0x9   : > { %p112_p3 = scmp.ne.s32.totalorder %s1203_s16, %s1199_s15  ;;  %p113_p4 = scmp.eq.s32.totalorder %s803_s20, 1 }
   0xa   : > { %s1280_s24 = scalar_select %p94_p1, %s1207_s17, %s96_s22  }
   0xb   : > { %p1282_p5 = por %p107_p2, %p106_p0  ;;  %p1286_p6 = por %p113_p4, %p112_p3 }
   0xc   : > { %p806_p7 = scmp.ge.s32.totalorder %s1211_s18, 1  ;;  %p172_p8 = scmp.lt.s32.totalorder %s1211_s18, 3 }
   0xe   : > { %p173_p9 = pnand %p806_p7, %p172_p8 }
   0xf   : > { %s809_s29 = sshll.u32 (!%p173_p9), %s1265_s19, 4  ;;  %s1368_s6 = sand.u32 (!%p173_p9), 1, %s1203_s16  }
  0x10   : > { %176 = sbr.rel (%p173_p9) target bundleno = 464 (0x1d0), region = 32  ;;  %p204_p10 = scmp.lt.s32.totalorder (!%p173_p9), %s809_s29, 31 }
  0x11   : > { %s807_s7 = sshll.u32 (!%p173_p9), %s1368_s6, 6  ;;  %s868_s9 = sshll.u32 (!%p173_p9), %s1265_s19, 10 }
  0x12   : > { %s1419_s14 = scalar_lea.hbm (!%p173_p9), %s1517_s3, %s868_s9  ;;  %s675_s20 = scalar_lea.sflag (!%p173_p9), [#allocation3], %s1368_s6 }
  0x13   : > { %s1213_s23 = smov (!%p173_p9), [#allocation2]  }
  0x14   : > { %s1125_s27 = sshll.u32 (!%p173_p9), %s1213_s23, 4  ;;  %s1126_s27 = int_to_ptr.vmem [resolvable:$false] %s1125_s27 }
  0x15   : > { %v1112_v0 = vld [vmem:[%s1515_s1] sm:$0xff]   ;;  %v413_v1 = vld [vmem:[%s1516_s2 + $0x78] sm:$0xff]  ;;  %s1526_s29 = smov (!%p204_p10, %s809_s29), 31  ;;  %v412_v2 = vld [vmem:[%s1516_s2 + $0x70] sm:$0xff]  ;;  %vm276_vm0 = vcmask 130048   ;;  %v575_v25 = vlaneseq  ;;  %s1127_s28 = scalar_lea.vmem %s1126_s27, 2048 }
  0x16   : > { %958 = vmatprep.subr.bf16.mxu0 %v1112_v0  ;;  %1032 = vmatprep.subr.mxu1 %v413_v1  ;;  %s810_s8 = sshll.u32 %s1526_s29, 2  ;;  %v411_v3 = vld [vmem:[%s1516_s2 + $0x68] sm:$0xff]  ;;  %v410_v4 = vld [vmem:[%s1516_s2 + $0x60] sm:$0xff]  ;;  %v409_v6 = vld [vmem:[%s1516_s2 + $0x58] sm:$0xff] }
  0x17   : > { %959 = vmatpush3.bf16.msra.mxu0 %v1112_v0  ;;  %1048 = vmatpush3.msra.mxu1 %v413_v1  ;;  %s1308_s13 = scalar_lea.vmem %s1514_s0, %s810_s8  ;;  %v408_v9 = vld [vmem:[%s1516_s2 + $0x50] sm:$0xff]  ;;  %v407_v10 = vld [vmem:[%s1516_s2 + $0x48] sm:$0xff]  ;;  %v406_v13 = vld [vmem:[%s1516_s2 + $0x40] sm:$0xff]  ;;  %v1365_v26 = vand.u32 127, %v575_v25  ;;  %s1380_s8 = scalar_lea.vmem [#allocation2], %s807_s7 }
  0x18   : > { %976 = vmatprep.subr.mxu0 %v413_v1  ;;  %1033 = vmatprep.subr.mxu1 %v412_v2  ;;  %v1113_v5 = vld [vmem:[%s1308_s13] sm:$0xff]   ;;  %v1114_v7 = vld [vmem:[%s1308_s13 + $0x8] sm:$0xff]   ;;  %v1115_v8 = vld [vmem:[%s1308_s13 + $0x10] sm:$0xff]   ;;  %s693_s10 = sshll.u32 %s1380_s8, 4  ;;  %s1421_s10 = int_to_ptr.vmem [resolvable:$true] %s693_s10 }
  0x19   : > { %1049 = vmatpush3.msra.mxu1 %v412_v2  ;;  %960 = vmatprep.mubr.msk.bf16.mxu0 %vm276_vm0, %v1113_v5  ;;  %v1116_v11 = vld [vmem:[%s1308_s13 + $0x18] sm:$0xff]   ;;  %v1117_v12 = vld [vmem:[%s1308_s13 + $0x20] sm:$0xff]   ;;  %v1118_v15 = vld [vmem:[%s1308_s13 + $0x28] sm:$0xff]   ;;  %vm577_vm1 = vcmp.eq.s32.totalorder %v1365_v26, 127  ;;  %s1121_s22 = scalar_lea.vmem %s1421_s10, 1024  ;;  %p1128_p0 = scmp.lt.s32.totalorder %s1421_s10, %s1126_s27 }
  0x1a   : > { %1034 = vmatprep.subr.mxu1 %v411_v3  ;;  %961 = vmatmul.mubr.msk.bf16.vlgmr.msra.gmra.mxu0 %vm276_vm0, %v1114_v7  ;;  %v405_v14 = vld [vmem:[%s1516_s2 + $0x38] sm:$0xff]  ;;  %v404_v16 = vld [vmem:[%s1516_s2 + $0x30] sm:$0xff]  ;;  %v403_v18 = vld [vmem:[%s1516_s2 + $0x28] sm:$0xff]  ;;  %p1122_p11 = scmp.ne.s32.totalorder %s1421_s10, %s1121_s22  ;;  %p1129_p1 = scmp.lt.s32.totalorder %s1127_s28, %s1121_s22 }
  0x1b   : > { %1050 = vmatpush3.msra.mxu1 %v411_v3  ;;  %964 = vmatprep.mubr.msk.bf16.mxu0 %vm276_vm0, %v1115_v8  ;;  %v1119_v17 = vld [vmem:[%s1308_s13 + $0x30] sm:$0xff]   ;;  %v402_v19 = vld [vmem:[%s1516_s2 + $0x20] sm:$0xff]  ;;  %v1120_v20 = vld [vmem:[%s1308_s13 + $0x38] sm:$0xff]  }
  0x1c   : > { %1035 = vmatprep.subr.mxu1 %v410_v4  ;;  %977 = vmatpush3.msra.mxu0 %v413_v1  ;;  %v401_v21 = vld [vmem:[%s1516_s2 + $0x18] sm:$0xff]  ;;  %v400_v22 = vld [vmem:[%s1516_s2 + $0x10] sm:$0xff]  ;;  %v399_v23 = vld [vmem:[%s1516_s2 + $0x8] sm:$0xff]  ;;  %p1123_p12 = pnand %p1122_p11, %p1282_p5  ;;  %p1130_p2 = por %p1129_p1, %p1128_p0 }
  0x1d   : > { %1051 = vmatpush3.msra.mxu1 %v410_v4  ;;  %978 = vmatprep.subr.mxu0 %v412_v2  ;;  %v398_v24 = vld [vmem:[%s1516_s2] sm:$0xff] }
  0x1e   : > { %1036 = vmatprep.subr.mxu1 %v409_v6  ;;  %979 = vmatpush3.msra.mxu0 %v412_v2  ;;  %p1124_p13 = pneg %p1123_p12 }
  0x1f   : > { %1052 = vmatpush3.msra.mxu1 %v409_v6  ;;  %980 = vmatprep.subr.mxu0 %v411_v3 }
  0x20   : > { %1037 = vmatprep.subr.mxu1 %v408_v9  ;;  %981 = vmatpush3.msra.mxu0 %v411_v3  ;;  %p1131_p3 = pnand %p1130_p2, %p1124_p13 }
  0x21   : > { %1053 = vmatpush3.msra.mxu1 %v408_v9  ;;  %982 = vmatprep.subr.mxu0 %v410_v4 }
  0x22   : > { %1038 = vmatprep.subr.mxu1 %v407_v10  ;;  %983 = vmatpush3.msra.mxu0 %v410_v4 }
  0x23   : > { %1054 = vmatpush3.msra.mxu1 %v407_v10  ;;  %965 = vmatmul.mubr.msk.bf16.gmra.mxu0 %vm276_vm0, %v1116_v11 }
  0x24   : > { %1039 = vmatprep.subr.mxu1 %v406_v13  ;;  %984 = vmatprep.subr.mxu0 %v409_v6 }
  0x25   : > { %968 = vmatprep.mubr.msk.bf16.mxu0 %vm276_vm0, %v1117_v12  ;;  %985 = vmatpush3.msra.mxu0 %v409_v6 }
  0x26   : > { %986 = vmatprep.subr.mxu0 %v408_v9  ;;  %1055 = vmatpush3.msra.mxu1 %v406_v13 }
  0x27   : > { %987 = vmatpush3.msra.mxu0 %v408_v9  ;;  %1040 = vmatprep.subr.mxu1 %v405_v14 }
  0x28   : > { %988 = vmatprep.subr.mxu0 %v407_v10  ;;  %1056 = vmatpush3.msra.mxu1 %v405_v14 }
  0x29   : > { %989 = vmatpush3.msra.mxu0 %v407_v10  ;;  %1041 = vmatprep.subr.mxu1 %v404_v16 }
  0x2a   : > { %990 = vmatprep.subr.mxu0 %v406_v13  ;;  %1057 = vmatpush3.msra.mxu1 %v404_v16 }
  0x2b   : > { %991 = vmatpush3.msra.mxu0 %v406_v13  ;;  %1042 = vmatprep.subr.mxu1 %v403_v18 }
  0x2c   : > { %969 = vmatmul.mubr.msk.bf16.gmra.mxu0 %vm276_vm0, %v1118_v15  ;;  %992 = vmatprep.subr.mxu0 %v405_v14 }
  0x2d   : > { %972 = vmatprep.mubr.msk.bf16.mxu0 %vm276_vm0, %v1119_v17  ;;  %993 = vmatpush3.msra.mxu0 %v405_v14 }
  0x2e   : > { %994 = vmatprep.subr.mxu0 %v404_v16  ;;  %1058 = vmatpush3.msra.mxu1 %v403_v18 }
  0x2f   : > { %995 = vmatpush3.msra.mxu0 %v404_v16  ;;  %1043 = vmatprep.subr.mxu1 %v402_v19 }
  0x30   : > { %996 = vmatprep.subr.mxu0 %v403_v18  ;;  %1059 = vmatpush3.msra.mxu1 %v402_v19 }
  0x31   : > { %997 = vmatpush3.msra.mxu0 %v403_v18  ;;  %1044 = vmatprep.subr.mxu1 %v401_v21 }
  0x32   : > { %998 = vmatprep.subr.mxu0 %v402_v19  ;;  %1060 = vmatpush3.msra.mxu1 %v401_v21 }
  0x33   : > { %999 = vmatpush3.msra.mxu0 %v402_v19  ;;  %1045 = vmatprep.subr.mxu1 %v400_v22 }
  0x34   : > { %973 = vmatmul.mubr.msk.bf16.gmra.mxu0 %vm276_vm0, %v1120_v20  ;;  %1000 = vmatprep.subr.mxu0 %v401_v21 }
  0x35   : > { %1001 = vmatpush3.msra.mxu0 %v401_v21  ;;  %1061 = vmatpush3.msra.mxu1 %v400_v22 }
  0x36   : > { %1002 = vmatprep.subr.mxu0 %v400_v22  ;;  %1046 = vmatprep.subr.mxu1 %v399_v23 }
  0x37   : > { %1003 = vmatpush3.msra.mxu0 %v400_v22  ;;  %1062 = vmatpush3.msra.mxu1 %v399_v23 }
  0x38   : > { %1004 = vmatprep.subr.mxu0 %v399_v23  ;;  %1047 = vmatprep.subr.mxu1 %v398_v24 }
  0x39   : > { %1005 = vmatpush3.msra.mxu0 %v399_v23  ;;  %1063 = vmatpush3.msra.mxu1 %v398_v24 }
  0x3a   : > { %1006 = vmatprep.subr.mxu0 %v398_v24 }
  0x3b   : > { %1007 = vmatpush3.msra.mxu0 %v398_v24 }
  0xda   : > { %v962_v27 = vpop.f32.mrf.mxu0 }
  0xdb   : > { %v580_v30 = vsel %vm577_vm1, 1.0, %v962_v27 }
  0xdc   : > { %v335_v28 = vpop.f32.mrf.mxu0 }
  0xdd   : > { %1008 = vmatprep.mubr.f32.mxu0 %v335_v28  ;;  %v578_v34 = vsel %vm577_vm1, 1.0, %v335_v28 }
  0xde   : > { %v963_v29 = vpop.f32.mrf.mxu0 }
  0xdf   : > { %v581_v31 = vsel %vm577_vm1, 1.0, %v963_v29 }
  0xe0   : > { %v878_v32 = vpack.c.bf16 %v581_v31, %v580_v30  ;;  %v338_v33 = vpop.f32.mrf.mxu0 }
  0xe1   : > { %v579_v35 = vsel %vm577_vm1, 1.0, %v338_v33  ;;  %1009 = vmatmul.mubr.f32.vlgmr.msra.gmra.mxu0 %v338_v33 }
  0xe2   : > { %910 = vst [vmem:[%s1380_s8 + $0x8] sm:$0xff] %v878_v32   ;;  %v873_v36 = vpack.c.bf16 %v579_v35, %v578_v34  ;;  %1011 = vmatprep.mubr.f32.mxu0 %v962_v27 }
  0xe3   : > { %v966_v37 = vpop.f32.mrf.mxu0 }
  0xe4   : > { %1017 = vmatprep.mubr.f32.mxu1 %v966_v37  ;;  %874 = vst [vmem:[%s1380_s8] sm:$0xff] %v873_v36   ;;  %v584_v40 = vsel %vm577_vm1, 1.0, %v966_v37 }
  0xe5   : > { %v351_v38 = vpop.f32.mrf.mxu0  ;;  %1012 = vmatmul.mubr.f32.gmra.mxu0 %v963_v29 }
  0xe6   : > { %1014 = vmatprep.mubr.f32.mxu0 %v351_v38  ;;  %v582_v44 = vsel %vm577_vm1, 1.0, %v351_v38 }
  0xe7   : > { %v967_v39 = vpop.f32.mrf.mxu0 }
  0xe8   : > { %v585_v41 = vsel %vm577_vm1, 1.0, %v967_v39  ;;  %1018 = vmatmul.mubr.f32.vlgmr.msra.gmra.mxu1 %v967_v39 }
  0xe9   : > { %v888_v42 = vpack.c.bf16 %v585_v41, %v584_v40  ;;  %v354_v43 = vpop.f32.mrf.mxu0 }
  0xea   : > { %v583_v45 = vsel %vm577_vm1, 1.0, %v354_v43  ;;  %1015 = vmatmul.mubr.f32.gmra.mxu0 %v354_v43 }
  0xeb   : > { %912 = vst [vmem:[%s1380_s8 + $0x18] sm:$0xff] %v888_v42   ;;  %v883_v46 = vpack.c.bf16 %v583_v45, %v582_v44 }
  0xec   : > { %v970_v47 = vpop.f32.mrf.mxu0 }
  0xed   : > { %911 = vst [vmem:[%s1380_s8 + $0x10] sm:$0xff] %v883_v46   ;;  %v588_v50 = vsel %vm577_vm1, 1.0, %v970_v47 }
  0xee   : > { %v367_v48 = vpop.f32.mrf.mxu0 }
  0xef   : > { %1020 = vmatprep.mubr.f32.mxu1 %v367_v48  ;;  %v586_v54 = vsel %vm577_vm1, 1.0, %v367_v48 }
  0xf0   : > { %v971_v49 = vpop.f32.mrf.mxu0 }
  0xf1   : > { %v589_v51 = vsel %vm577_vm1, 1.0, %v971_v49 }
  0xf2   : > { %v898_v52 = vpack.c.bf16 %v589_v51, %v588_v50  ;;  %v370_v53 = vpop.f32.mrf.mxu0 }
  0xf3   : > { %v587_v55 = vsel %vm577_vm1, 1.0, %v370_v53  ;;  %1021 = vmatmul.mubr.f32.gmra.mxu1 %v370_v53 }
  0xf4   : > { %914 = vst [vmem:[%s1380_s8 + $0x28] sm:$0xff] %v898_v52   ;;  %v893_v56 = vpack.c.bf16 %v587_v55, %v586_v54  ;;  %v974_v57 = vpop.f32.mrf.mxu0  ;;  %1023 = vmatprep.mubr.f32.mxu1 %v970_v47 }
  0xf5   : > { %v592_v60 = vsel %vm577_vm1, 1.0, %v974_v57 }
  0xf6   : > { %913 = vst [vmem:[%s1380_s8 + $0x20] sm:$0xff] %v893_v56   ;;  %v383_v58 = vpop.f32.mrf.mxu0 }
  0xf7   : > { %1024 = vmatmul.mubr.f32.gmra.mxu1 %v971_v49  ;;  %v590_v0 = vsel %vm577_vm1, 1.0, %v383_v58 }
  0xf8   : > { %v975_v59 = vpop.f32.mrf.mxu0  ;;  %1026 = vmatprep.mubr.f32.mxu1 %v383_v58 }
  0xf9   : > { %v593_v61 = vsel %vm577_vm1, 1.0, %v975_v59 }
  0xfa   : > { %v908_v62 = vpack.c.bf16 %v593_v61, %v592_v60  ;;  %v386_v63 = vpop.f32.mrf.mxu0 }
  0xfb   : > { %v591_v1 = vsel %vm577_vm1, 1.0, %v386_v63  ;;  %1027 = vmatmul.mubr.f32.gmra.mxu1 %v386_v63 }
  0xfc   : > { %916 = vst [vmem:[%s1380_s8 + $0x38] sm:$0xff] %v908_v62   ;;  %v903_v2 = vpack.c.bf16 %v591_v1, %v590_v0  ;;  %1029 = vmatprep.mubr.f32.mxu1 %v974_v57 }
  0xfe   : > { %915 = vst [vmem:[%s1380_s8 + $0x30] sm:$0xff] %v903_v2  }
  0xff   : > { %1030 = vmatmul.mubr.f32.gmra.mxu1 %v975_v59 }
 0x100   : > { %1134 = shalt.err (!%p1131_p3)
}
 0x101   : > { %s1135_s13 = scalar_lea.hbm %s1419_s14, 1024  ;;  %s1139_s5 = scalar_lea.hbm %s1517_s3, 2048 }
 0x102   : > { %p1136_p4 = scmp.ne.s32.totalorder %s1419_s14, %s1135_s13  ;;  %p1140_p9 = scmp.lt.s32.totalorder %s1419_s14, %s1517_s3 }
 0x103   : > { %p1141_p10 = scmp.lt.s32.totalorder %s1139_s5, %s1135_s13 }
 0x104   : > { %p1137_p7 = pnand %p1136_p4, %p1282_p5 }
 0x105   : > { %p1142_p11 = por %p1141_p10, %p1140_p9 }
 0x106   : > { %p1138_p8 = pneg %p1137_p7 }
 0x108   : > { %p1143_p12 = pnand %p1142_p11, %p1138_p8 }
 0x10a   : > { %1146 = shalt.err (!%p1143_p12)
}
 0x10b   : > { %s1214_s9 = smov 64   ;;  %s1215_s11 = smov 4  }
 0x10c   : > { %1064 = dma.vmem_to_hbm [thread:$0]  (%p1282_p5), %s1421_s10, 1024, %s1419_s14, %s675_s20, %s1214_s9, %s1214_s9, %s1215_s11  }
 0x10d   : > { %s808_s12 = sshll.u32 %s1368_s6, 7  ;;  %s869_s10 = sshll.u32 %s1265_s19, 11 }
 0x10e   : > { %s1447_s22 = scalar_lea.vmem [#allocation4], %s808_s12  ;;  %s1468_s27 = scalar_lea.hbm %s1518_s4, %s869_s10 }
 0x10f   : > { %s709_s14 = sshll.u32 %s1447_s22, 4  ;;  %s680_s28 = scalar_lea.sflag [#allocation5], %s1368_s6  ;;  %s1470_s14 = int_to_ptr.vmem [resolvable:$true] %s709_s14 }
 0x110   : > { %s1147_s13 = scalar_lea.vmem %s1470_s14, 2048  ;;  %s1216_s19 = smov [#allocation4]  }
 0x111   : > { %p1148_p13 = scmp.ne.s32.totalorder %s1470_s14, %s1147_s13  ;;  %s1151_s29 = sshll.u32 %s1216_s19, 4  ;;  %s1152_s29 = int_to_ptr.vmem [resolvable:$false] %s1151_s29 }
 0x112   : > { %s1153_s30 = scalar_lea.vmem %s1152_s29, 4096  ;;  %p1154_p2 = scmp.lt.s32.totalorder %s1470_s14, %s1152_s29 }
 0x113   : > { %p1149_p0 = pnand %p1148_p13, %p1282_p5  ;;  %p1155_p3 = scmp.lt.s32.totalorder %s1153_s30, %s1147_s13 }
 0x115   : > { %p1150_p1 = pneg %p1149_p0  ;;  %p1156_p4 = por %p1155_p3, %p1154_p2 }
 0x117   : > { %p1157_p7 = pnand %p1156_p4, %p1150_p1 }
 0x1a1   : > { %v1010_v3 = vpop.f32.mrf.mxu0 }
 0x1a2   : > { %560 = vst [vmem:[%s1447_s22 + $0x8] sm:$0xff] %v1010_v3 }
 0x1a3   : > { %v480_v4 = vpop.f32.mrf.mxu0 }
 0x1a4   : > { %559 = vst [vmem:[%s1447_s22] sm:$0xff] %v480_v4 }
 0x1a5   : > { %v1013_v5 = vpop.f32.mrf.mxu0 }
 0x1a6   : > { %562 = vst [vmem:[%s1447_s22 + $0x18] sm:$0xff] %v1013_v5 }
 0x1a7   : > { %v490_v6 = vpop.f32.mrf.mxu0 }
 0x1a8   : > { %v1019_v7 = vpop.f32.mrf.mxu1  ;;  %561 = vst [vmem:[%s1447_s22 + $0x10] sm:$0xff] %v490_v6 }
 0x1a9   : > { %566 = vst [vmem:[%s1447_s22 + $0x38] sm:$0xff] %v1019_v7 }
 0x1aa   : > { %v1016_v8 = vpop.f32.mrf.mxu0  ;;  %v510_v9 = vpop.f32.mrf.mxu1 }
 0x1ab   : > { %564 = vst [vmem:[%s1447_s22 + $0x28] sm:$0xff] %v1016_v8  ;;  %565 = vst [vmem:[%s1447_s22 + $0x30] sm:$0xff] %v510_v9 }
 0x1ac   : > { %v500_v10 = vpop.f32.mrf.mxu0 }
 0x1ad   : > { %563 = vst [vmem:[%s1447_s22 + $0x20] sm:$0xff] %v500_v10 }
 0x1b3   : > { %v1022_v11 = vpop.f32.mrf.mxu1 }
 0x1b4   : > { %568 = vst [vmem:[%s1447_s22 + $0x48] sm:$0xff] %v1022_v11 }
 0x1b5   : > { %v520_v12 = vpop.f32.mrf.mxu1 }
 0x1b6   : > { %567 = vst [vmem:[%s1447_s22 + $0x40] sm:$0xff] %v520_v12 }
 0x1b7   : > { %v1025_v13 = vpop.f32.mrf.mxu1 }
 0x1b8   : > { %570 = vst [vmem:[%s1447_s22 + $0x58] sm:$0xff] %v1025_v13 }
 0x1b9   : > { %v530_v14 = vpop.f32.mrf.mxu1 }
 0x1ba   : > { %569 = vst [vmem:[%s1447_s22 + $0x50] sm:$0xff] %v530_v14 }
 0x1bb   : > { %v1028_v15 = vpop.f32.mrf.mxu1 }
 0x1bc   : > { %572 = vst [vmem:[%s1447_s22 + $0x68] sm:$0xff] %v1028_v15 }
 0x1bd   : > { %v540_v16 = vpop.f32.mrf.mxu1 }
 0x1be   : > { %571 = vst [vmem:[%s1447_s22 + $0x60] sm:$0xff] %v540_v16 }
 0x1bf   : > { %v1031_v17 = vpop.f32.mrf.mxu1 }
 0x1c0   : > { %574 = vst [vmem:[%s1447_s22 + $0x78] sm:$0xff] %v1031_v17 }
 0x1c1   : > { %v550_v18 = vpop.f32.mrf.mxu1 }
 0x1c2   : > { %573 = vst [vmem:[%s1447_s22 + $0x70] sm:$0xff] %v550_v18 }
 0x1c3   : > { %1160 = shalt.err (!%p1157_p7)
}
 0x1c4   : > { %s1161_s5 = scalar_lea.hbm %s1468_s27, 2048  ;;  %s1165_s9 = scalar_lea.hbm %s1518_s4, 4096 }
 0x1c5   : > { %p1162_p8 = scmp.ne.s32.totalorder %s1468_s27, %s1161_s5  ;;  %p1166_p11 = scmp.lt.s32.totalorder %s1468_s27, %s1518_s4 }
 0x1c6   : > { %p1167_p12 = scmp.lt.s32.totalorder %s1165_s9, %s1161_s5 }
 0x1c7   : > { %p1163_p9 = pnand %p1162_p8, %p1282_p5 }
 0x1c8   : > { %p1168_p13 = por %p1167_p12, %p1166_p11 }
 0x1c9   : > { %p1164_p10 = pneg %p1163_p9 }
 0x1cb   : > { %p1169_p0 = pnand %p1168_p13, %p1164_p10 }
 0x1cd   : > { %1172 = shalt.err (!%p1169_p0)
}
 0x1ce   : > { %s1217_s22 = smov 128   ;;  %s1218_s10 = smov 8  }
 0x1cf   : > { %1065 = dma.vmem_to_hbm [thread:$0]  (%p1282_p5), %s1470_s14, 2048, %s1468_s27, %s680_s28, %s1217_s22, %s1217_s22, %s1218_s10  }
 0x1d0 PF: > { %p1075_p1 = scmp.ge.s32.totalorder %s1211_s18, 2  ;;  %s724_s20 = sand.u32 1, %s1199_s15  }
 0x1d1   : > { %s725_s23 = scalar_lea.sflag [#allocation3], %s724_s20 }
 0x1d2   : > { %p1069_p2 = pnand %p1075_p1, %p1286_p6 }
 0x1d4   : > { %p1070_p3 = pneg %p1069_p2 }
 0x1d6   : > { %1190 = dma.done.wait (%p1070_p3), %s725_s23, 1024  }
 0x1d7   : > { %1192 = vsyncadd (%p1070_p3), %s725_s23, 4294966272  ;;  %s734_s13 = scalar_lea.sflag [#allocation5], %s724_s20 }
 0x1d8   : > { %1194 = dma.done.wait (%p1070_p3), %s734_s13, 2048  }
 0x1d9   : > { %1196 = vsyncadd (%p1070_p3), %s734_s13, 4294965248  ;;  %p18_p5 = scmp.ge.s32.totalorder %s1269_s21, 4   ;;  %s1521_s15 = smov %s1203_s16 }
 0x1da   : > { %s1522_s16 = smov %s1207_s17  ;;  %s1523_s17 = smov %s1280_s24 }
 0x1db   : > { %s1524_s18 = smov %s1269_s21  ;;  %20 = sbr.rel (!%p18_p5) target bundleno = 5 (0x5), region = 84 }
 0x1e0   :  { %739 = vsyncpa [#allocation3], 1 }
 0x1e1   :  { %741 = vsyncpa [#allocation3 + $0x1], 1 }
 0x1e2   :  { %742 = vsyncpa [#allocation5], 1 }
 0x1e3   :  { %744 = vsyncpa [#allocation5 + $0x1], 1 }

</bundles_post_ra>
